<compile_context>
chip_gen: v5e
topology: v5e:2x2
jax: 0.10.0
libtpu: 0.0.40
codegen_flags: <defaults>
</compile_context>

<pallas_src>
import math
import functools

import jax
import jax.numpy as jnp
from jax import lax
from jax.experimental import pallas as pl
from jax.experimental.pallas import tpu as pltpu


# ---------------------------------------------------------------------------
# Helpers
# ---------------------------------------------------------------------------
def _pick_tile(size, candidates):
    """Largest candidate tile that evenly divides `size`, else the full size."""
    for t in candidates:
        if t <= size and size % t == 0:
            return t
    return size


def _vmem_budget(default_capacity=64 * 1024 * 1024, frac=0.75):
    """Per-chip VMEM budget: ~48 MiB on v7x (64 MiB), ~96 MiB on v5e/v6e."""
    try:
        cap = getattr(pltpu.get_tpu_info(), "vmem_capacity_bytes", default_capacity)
    except Exception:
        cap = default_capacity
    cap = cap or default_capacity
    return int(cap * frac)


def _estimate_flash_vmem(tq, tkv, D, d_k, H, cdt_size, out_size, wo_resident):
    q_tile = 2 * tq * d_k * cdt_size
    kv_tiles = 2 * 2 * tkv * d_k * cdt_size
    wo_tiles = 2 * (H if wo_resident else 1) * d_k * D * cdt_size
    bo_tile = 2 * D * 4
    out_tile = 2 * tq * D * out_size
    scratch = tq * 2 * 4 + tq * d_k * 4 + tq * D * 4
    return q_tile + kv_tiles + wo_tiles + bo_tile + out_tile + scratch


def _select_flash_tiles(Sq, Skv, D, d_k, H, cdt_size, out_size, wo_resident,
                        budget, block_q=None, block_kv=None):
    tq_cands = [t for t in (512, 256, 128) if t <= Sq and Sq % t == 0] or [Sq]
    tkv_cands = [t for t in (2048, 1024, 512, 256, 128)
                 if t <= Skv and Skv % t == 0] or [Skv]
    if block_q is not None:
        tq_cands = [block_q]
    if block_kv is not None:
        tkv_cands = [block_kv]
    for tq in tq_cands:
        for tkv in tkv_cands:
            if _estimate_flash_vmem(tq, tkv, D, d_k, H, cdt_size, out_size,
                                    wo_resident) <= budget:
                return tq, tkv
    return tq_cands[-1], tkv_cands[-1]


# ---------------------------------------------------------------------------
# One-time parameter re-layout (do NOT call per forward pass)
# ---------------------------------------------------------------------------
def prepare_params(params, num_heads, matmul_dtype=jnp.bfloat16):
    """PyTorch Linear computes y = x @ W.T + b with W of shape (out, in).

    Pre-split the projection weights per head so no kernel ever slices the
    lane dimension, and fold the 1/sqrt(d_k) softmax scale into the Q
    weights/bias so the score tile needs no extra VPU multiply:
      wq_h/wk_h/wv_h : (H, D, d_k)   so  q_h = x @ wq_h[h] + bq_h[h]
      wo_h           : (H, d_k, D)   so  out = sum_h head_h @ wo_h[h] + bo
    Weights are cast to `matmul_dtype` (bf16 default); biases stay f32
    (Q bias carries the folded scale).
    """
    D = params["wq"].shape[0]
    assert D % num_heads == 0
    d_k = D // num_heads
    scale = 1.0 / math.sqrt(d_k)

    def split_in_proj(w, s=1.0):
        # (D_out, D_in) -> (H, D_in, d_k), optionally pre-scaled.
        return (jnp.transpose(w.reshape(num_heads, d_k, D), (0, 2, 1)) * s
                ).astype(matmul_dtype)

    return {
        "wq_h": split_in_proj(params["wq"], scale),
        "wk_h": split_in_proj(params["wk"]),
        "wv_h": split_in_proj(params["wv"]),
        "wo_h": jnp.transpose(params["wo"]).reshape(num_heads, d_k, D
                                                    ).astype(matmul_dtype),
        "bq_h": (params["bq"] * scale).reshape(num_heads, 1, d_k
                                               ).astype(jnp.float32),
        "bk_h": params["bk"].reshape(num_heads, 1, d_k).astype(jnp.float32),
        "bv_h": params["bv"].reshape(num_heads, 1, d_k).astype(jnp.float32),
        "bo": params["bo"].reshape(1, D).astype(jnp.float32),
    }


# ---------------------------------------------------------------------------
# Stage 1: head-major QKV projection kernel
# ---------------------------------------------------------------------------
def _proj_kernel_resident(x_ref, w_ref, b_ref, out_ref):
    h = pl.program_id(2)
    out_ref[0, 0] = (
        jnp.dot(x_ref[0], w_ref[h], preferred_element_type=jnp.float32)
        + b_ref[h]
    ).astype(out_ref.dtype)


def _proj_kernel_blocked(x_ref, w_ref, b_ref, out_ref):
    out_ref[0, 0] = (
        jnp.dot(x_ref[0], w_ref[0], preferred_element_type=jnp.float32)
        + b_ref[0]
    ).astype(out_ref.dtype)


def _project_heads(x, w_h, b_h, *, block_s=None, vmem_budget):
    """x: (B, S, D) -> head-major (B, H, S, d_k) in w_h.dtype."""
    B, S, D = x.shape
    H, _, d_k = w_h.shape
    cdt_size = jnp.dtype(w_h.dtype).itemsize

    ts = block_s or _pick_tile(S, (512, 256, 128))
    while (2 * ts * (D + d_k) * cdt_size > vmem_budget // 2
           and ts % 2 == 0 and ts > 8 and S % (ts // 2) == 0):
        ts //= 2
    n_s = S // ts

    # Keep the whole per-head weight stack VMEM-resident (DMA once per launch)
    # when it fits the budget; otherwise block on the head axis.
    resident = 2 * H * D * d_k * cdt_size <= vmem_budget // 3
    if resident:
        kernel = _proj_kernel_resident
        w_spec = pl.BlockSpec((H, D, d_k), lambda b, si, h: (0, 0, 0))
        b_spec = pl.BlockSpec((H, 1, d_k), lambda b, si, h: (0, 0, 0))
    else:
        kernel = _proj_kernel_blocked
        w_spec = pl.BlockSpec((1, D, d_k), lambda b, si, h: (h, 0, 0))
        b_spec = pl.BlockSpec((1, 1, d_k), lambda b, si, h: (h, 0, 0))

    return pl.pallas_call(
        kernel,
        out_shape=jax.ShapeDtypeStruct((B, H, S, d_k), w_h.dtype),
        grid_spec=pltpu.PrefetchScalarGridSpec(
            num_scalar_prefetch=0,
            grid=(B, n_s, H),
            in_specs=[pl.BlockSpec((1, ts, D), lambda b, si, h: (b, si, 0)),
                      w_spec, b_spec],
            out_specs=pl.BlockSpec((1, 1, ts, d_k),
                                   lambda b, si, h: (b, h, si, 0))),
        compiler_params=pltpu.CompilerParams(
            dimension_semantics=("parallel", "parallel", "arbitrary"),
            vmem_limit_bytes=vmem_budget),
    )(x, w_h, b_h)


# ---------------------------------------------------------------------------
# Stage 2: flash attention + fused output projection
# ---------------------------------------------------------------------------
def _flash_kernel(q_ref, k_ref, v_ref, wo_ref, bo_ref, out_ref,
                  m_sc, l_sc, acc_sc, out_sc, *, wo_resident, approx_recip):
    h = pl.program_id(2)
    ki = pl.program_id(3)
    nh = pl.num_programs(2)
    nk = pl.num_programs(3)

    # Zero the cross-head output accumulator at the start of each (b, qi) tile.
    @pl.when(jnp.logical_and(h == 0, ki == 0))
    def _():
        out_sc[...] = jnp.zeros_like(out_sc)

    # New head: reset online-softmax state.
    @pl.when(ki == 0)
    def _():
        m_sc[...] = jnp.full_like(m_sc, -jnp.inf)
        l_sc[...] = jnp.zeros_like(l_sc)
        acc_sc[...] = jnp.zeros_like(acc_sc)

    q = q_ref[0, 0]   # (tq, d_k)  — scale already folded into the Q weights
    k = k_ref[0, 0]   # (tkv, d_k)
    v = v_ref[0, 0]   # (tkv, d_k)

    # Scores (tq, tkv): contract d_k directly — no explicit transpose.
    s = lax.dot_general(q, k, dimension_numbers=(((1,), (1,)), ((), ())),
                        preferred_element_type=jnp.float32)

    # Online softmax update (all f32).
    m_prev = m_sc[...]
    m_new = jnp.maximum(m_prev, jnp.max(s, axis=-1, keepdims=True))
    alpha = jnp.exp(m_prev - m_new)
    p = jnp.exp(s - m_new)
    l_sc[...] = alpha * l_sc[...] + jnp.sum(p, axis=-1, keepdims=True)
    acc_sc[...] = alpha * acc_sc[...] + jnp.dot(
        p.astype(v.dtype), v, preferred_element_type=jnp.float32)
    m_sc[...] = m_new

    # Last KV tile for this head: normalize and fuse the output projection.
    @pl.when(ki == nk - 1)
    def _():
        head_out = acc_sc[...] * pl.reciprocal(l_sc[...], approx=approx_recip)
        wo_h = wo_ref[h] if wo_resident else wo_ref[0]
        out_sc[...] += jnp.dot(head_out.astype(wo_ref.dtype), wo_h,
                               preferred_element_type=jnp.float32)

    # Last head & last KV tile: add output bias and store the (tq, D) tile.
    @pl.when(jnp.logical_and(h == nh - 1, ki == nk - 1))
    def _():
        out_ref[0] = (out_sc[...] + bo_ref[...]).astype(out_ref.dtype)


def multi_head_attention(query, key, value, prepared, *,
                         block_q=None, block_kv=None, block_proj=None,
                         out_dtype=None, vmem_limit_bytes=None):
    B, Sq, D = query.shape
    Bk, Skv, Dk = key.shape
    assert value.shape == key.shape and Bk == B and Dk == D

    H, _, d_k = prepared["wq_h"].shape
    assert H * d_k == D

    cdt = jnp.dtype(prepared["wq_h"].dtype)          # compute (MXU) dtype
    out_dtype = jnp.dtype(out_dtype) if out_dtype is not None else jnp.dtype(query.dtype)
    cdt_size = cdt.itemsize
    out_size = out_dtype.itemsize

    budget = vmem_limit_bytes or _vmem_budget()

    # Cast activations once at the boundary (halves QKV DMA on the bf16 path).
    query = query.astype(cdt)
    key = key.astype(cdt)
    value = value.astype(cdt)

    # ---- Stage 1: head-major projections (computed exactly once) ----
    q_hm = _project_heads(query, prepared["wq_h"], prepared["bq_h"],
                          block_s=block_proj, vmem_budget=budget)
    k_hm = _project_heads(key, prepared["wk_h"], prepared["bk_h"],
                          block_s=block_proj, vmem_budget=budget)
    v_hm = _project_heads(value, prepared["wv_h"], prepared["bv_h"],
                          block_s=block_proj, vmem_budget=budget)

    # ---- Stage 2: flash attention with fused output projection ----
    wo_resident = 2 * H * d_k * D * cdt_size <= budget // 3
    tq, tkv = _select_flash_tiles(Sq, Skv, D, d_k, H, cdt_size, out_size,
                                  wo_resident, budget, block_q, block_kv)
    # v7x megacore: only the 'parallel' (B, qi) axes shard across its 2 cores.
    while B * (Sq // tq) < 2 and tq % 2 == 0 and tq > 8 and Sq % (tq // 2) == 0:
        tq //= 2
    n_q, n_kv = Sq // tq, Skv // tkv

    q_spec = pl.BlockSpec((1, 1, tq, d_k), lambda b, qi, h, ki: (b, h, qi, 0))
    kv_spec = pl.BlockSpec((1, 1, tkv, d_k), lambda b, qi, h, ki: (b, h, ki, 0))
    if wo_resident:
        wo_spec = pl.BlockSpec((H, d_k, D), lambda b, qi, h, ki: (0, 0, 0))
    else:
        wo_spec = pl.BlockSpec((1, d_k, D), lambda b, qi, h, ki: (h, 0, 0))
    bo_spec = pl.BlockSpec((1, D), lambda b, qi, h, ki: (0, 0))
    out_spec = pl.BlockSpec((1, tq, D), lambda b, qi, h, ki: (b, qi, 0))

    kernel = functools.partial(
        _flash_kernel,
        wo_resident=wo_resident,
        approx_recip=(cdt != jnp.dtype(jnp.float32)))

    return pl.pallas_call(
        kernel,
        out_shape=jax.ShapeDtypeStruct((B, Sq, D), out_dtype),
        grid_spec=pltpu.PrefetchScalarGridSpec(
            num_scalar_prefetch=0,
            grid=(B, n_q, H, n_kv),
            in_specs=[q_spec, kv_spec, kv_spec, wo_spec, bo_spec],
            out_specs=out_spec,
            scratch_shapes=[
                pltpu.VMEM((tq, 1), jnp.float32),     # m_sc  (running max)
                pltpu.VMEM((tq, 1), jnp.float32),     # l_sc  (running denom)
                pltpu.VMEM((tq, d_k), jnp.float32),   # acc_sc (per-head PV acc)
                pltpu.VMEM((tq, D), jnp.float32),     # out_sc (cross-head acc)
            ]),
        compiler_params=pltpu.CompilerParams(
            dimension_semantics=("parallel", "parallel", "arbitrary", "arbitrary"),
            vmem_limit_bytes=budget),
    )(q_hm, k_hm, v_hm, prepared["wo_h"], prepared["bo"])


# ---------------------------------------------------------------------------
# Pure-JAX reference mirroring the PyTorch module
# ---------------------------------------------------------------------------
def mha_reference(query, key, value, params, num_heads):
    B, Sq, D = query.shape
    Skv = key.shape[1]
    d_k = D // num_heads

    def lin(x, w, b):
        return x @ w.T + b

    q = lin(query, params["wq"], params["bq"]).reshape(B, Sq, num_heads, d_k).transpose(0, 2, 1, 3)
    k = lin(key, params["wk"], params["bk"]).reshape(B, Skv, num_heads, d_k).transpose(0, 2, 1, 3)
    v = lin(value, params["wv"], params["bv"]).reshape(B, Skv, num_heads, d_k).transpose(0, 2, 1, 3)
    scores = jnp.einsum("bhqd,bhkd->bhqk", q, k) / math.sqrt(d_k)
    attn = jax.nn.softmax(scores, axis=-1)
    out = jnp.einsum("bhqk,bhkd->bhqd", attn, v)
    out = out.transpose(0, 2, 1, 3).reshape(B, Sq, D)
    return lin(out, params["wo"], params["bo"])


if __name__ == "__main__":
    B, S, D, H = 2, 8, 32, 4   # batch, seq, d_model, num_heads
    key0 = jax.random.PRNGKey(0)
    keys = jax.random.split(key0, 12)

    bound = 1.0 / math.sqrt(D)

    def uinit(k, shape):
        return jax.random.uniform(k, shape, jnp.float32, -bound, bound)

    params = {
        "wq": uinit(keys[0], (D, D)), "bq": uinit(keys[1], (D,)),
        "wk": uinit(keys[2], (D, D)), "bk": uinit(keys[3], (D,)),
        "wv": uinit(keys[4], (D, D)), "bv": uinit(keys[5], (D,)),
        "wo": uinit(keys[6], (D, D)), "bo": uinit(keys[7], (D,)),
    }

    query = jax.random.normal(keys[8], (B, S, D), jnp.float32)
    key_in = jax.random.normal(keys[9], (B, S, D), jnp.float32)
    value = jax.random.normal(keys[10], (B, S, D), jnp.float32)

    ref = mha_reference(query, key_in, value, params, H)

    # f32-matmul path: tight numerical check of the kernel structure
    # (exact reciprocal is used automatically on this path).
    prep_f32 = prepare_params(params, H, matmul_dtype=jnp.float32)
    out_f32 = jax.block_until_ready(multi_head_attention(query, key_in, value, prep_f32))
    assert out_f32.shape == (B, S, D)
    assert jnp.allclose(out_f32, ref, atol=2e-3, rtol=2e-3), "f32 kernel mismatch vs reference"

    # bf16-matmul production path: bf16 activations/weights, f32 accumulation,
    # EUP approx reciprocal.
    prep_bf16 = prepare_params(params, H)
    out_bf16 = jax.block_until_ready(multi_head_attention(query, key_in, value, prep_bf16))
    assert out_bf16.shape == (B, S, D)
    assert jnp.allclose(out_bf16, ref, atol=5e-2, rtol=5e-2), "bf16 kernel mismatch vs reference"

    print("KERNEL_OK")
</pallas_src>

<mosaic_0001>
module attributes {stable_mosaic.version = 11 : i64} {
  func.func @_proj_kernel_resident(%arg0: i32, %arg1: i32, %arg2: i32, %arg3: memref<1x8x32xf32, #tpu.memory_space<vmem>>, %arg4: memref<4x32x8xf32, #tpu.memory_space<vmem>>, %arg5: memref<4x1x8xf32, #tpu.memory_space<vmem>>, %arg6: memref<1x1x8x8xf32, #tpu.memory_space<vmem>>) attributes {dimension_semantics = [#tpu.dimension_semantics<parallel>, #tpu.dimension_semantics<parallel>, #tpu.dimension_semantics<arbitrary>], iteration_bounds = array<i64: 2, 1, 4>, scalar_prefetch = 0 : i64, scratch_operands = 0 : i64, tpu.core_type = #tpu.core_type<tc>, window_params = [{transform_indices = @transform_0, window_bounds = array<i64: 1, 8, 32>}, {pipeline_mode = #tpu.pipeline_mode<synchronous>, transform_indices = @transform_1, window_bounds = array<i64: 4, 32, 8>}, {pipeline_mode = #tpu.pipeline_mode<synchronous>, transform_indices = @transform_2, window_bounds = array<i64: 4, 1, 8>}, {transform_indices = @transform_3, window_bounds = array<i64: 1, 1, 8, 8>}]} {
    %c0 = arith.constant 0 : index
    %c0_0 = arith.constant 0 : index
    %c0_1 = arith.constant 0 : index
    %0 = vector.load %arg3[%c0, %c0_0, %c0_1] : memref<1x8x32xf32, #tpu.memory_space<vmem>>, vector<1x8x32xf32>
    %1 = vector.shape_cast %0 : vector<1x8x32xf32> to vector<8x32xf32>
    %2 = arith.index_cast %arg2 : i32 to index
    %c0_2 = arith.constant 0 : index
    %c0_3 = arith.constant 0 : index
    %3 = vector.load %arg4[%2, %c0_2, %c0_3] : memref<4x32x8xf32, #tpu.memory_space<vmem>>, vector<1x32x8xf32>
    %4 = vector.shape_cast %3 : vector<1x32x8xf32> to vector<32x8xf32>
    %cst = arith.constant dense<0.000000e+00> : vector<8x8xf32>
    %5 = tpu.matmul %1, %4, %cst {dimension_numbers = #tpu.dot_dimension_numbers<[1], [0], [0], [1], [0, 0, 1, 1], [], []>} : vector<8x32xf32>, vector<32x8xf32>, vector<8x8xf32> -> vector<8x8xf32>
    %6 = arith.index_cast %arg2 : i32 to index
    %c0_4 = arith.constant 0 : index
    %c0_5 = arith.constant 0 : index
    %7 = vector.load %arg5[%6, %c0_4, %c0_5] : memref<4x1x8xf32, #tpu.memory_space<vmem>>, vector<1x1x8xf32>
    %8 = vector.shape_cast %7 : vector<1x1x8xf32> to vector<1x8xf32>
    %9 = vector.broadcast %8 : vector<1x8xf32> to vector<8x8xf32>
    %10 = arith.addf %5, %9 : vector<8x8xf32>
    %c0_6 = arith.constant 0 : index
    %c0_7 = arith.constant 0 : index
    %c0_8 = arith.constant 0 : index
    %c0_9 = arith.constant 0 : index
    %11 = vector.load %arg6[%c0_6, %c0_7, %c0_8, %c0_9] : memref<1x1x8x8xf32, #tpu.memory_space<vmem>>, vector<1x1x8x8xf32>
    %12 = vector.shape_cast %11 : vector<1x1x8x8xf32> to vector<8x8xf32>
    %13 = vector.shape_cast %10 : vector<8x8xf32> to vector<1x1x8x8xf32>
    tpu.vector_store %arg6[%c0_6, %c0_7, %c0_8, %c0_9], %13 {strides = array<i32>} : memref<1x1x8x8xf32, #tpu.memory_space<vmem>>, vector<1x1x8x8xf32>,
    return
  }
  func.func @transform_0(%arg0: i32, %arg1: i32, %arg2: i32) -> (i32, i32, i32) {
    %c0_i32 = arith.constant 0 : i32
    %c0_i32_0 = arith.constant 0 : i32
    return %arg0, %arg1, %c0_i32 : i32, i32, i32
  }
  func.func @transform_1(%arg0: i32, %arg1: i32, %arg2: i32) -> (i32, i32, i32) {
    %c0_i32 = arith.constant 0 : i32
    %c0_i32_0 = arith.constant 0 : i32
    %c0_i32_1 = arith.constant 0 : i32
    %c0_i32_2 = arith.constant 0 : i32
    return %c0_i32, %c0_i32_0, %c0_i32_1 : i32, i32, i32
  }
  func.func @transform_2(%arg0: i32, %arg1: i32, %arg2: i32) -> (i32, i32, i32) {
    %c0_i32 = arith.constant 0 : i32
    %c0_i32_0 = arith.constant 0 : i32
    %c0_i32_1 = arith.constant 0 : i32
    %c0_i32_2 = arith.constant 0 : i32
    return %c0_i32, %c0_i32_0, %c0_i32_1 : i32, i32, i32
  }
  func.func @transform_3(%arg0: i32, %arg1: i32, %arg2: i32) -> (i32, i32, i32, i32) {
    %c0_i32 = arith.constant 0 : i32
    %c0_i32_0 = arith.constant 0 : i32
    return %arg0, %arg2, %arg1, %c0_i32 : i32, i32, i32, i32
  }
}

</mosaic_0001>

<bundles_post_ra>
// kernel: tpu_custom_call.1
= control target key start
LH: loop header
LB: loop body
LE: loop exit
PB: predicated region body
PF: predicated region fallthrough
CT: control target
= control target key end

     0   :  { %s669_s0 = inlined_call_operand.vmem [shape: f32[2,8,32], index: 0, kind: input, shape index: {}]   ;;  %s670_s1 = inlined_call_operand.vmem [shape: f32[4,32,8], index: 1, kind: input, shape index: {}]   ;;  %s671_s2 = inlined_call_operand.vmem [shape: f32[4,1,8], index: 2, kind: input, shape index: {}]   ;;  %s672_s3 = inlined_call_operand.hbm [shape: f32[2,4,8,8], index: 3, kind: output, shape index: {}]  }
   0x1   :  { %673 = sst [smem:[#allocation5_spill]] %s670_s1 }
   0x2   :  { %8 = vsyncpa [#allocation3], 0 }
   0x3   :  { %10 = vsyncpa [#allocation3 + $0x1], 0  ;;  %s541_s12 = smov 0   ;;  %s543_s13 = smov 0  }
   0x4   :  { %s545_s14 = smov 0   ;;  %s547_s15 = smov 0  }
   0x5   :  { %s549_s16 = smov 0   ;;  %s551_s17 = smov 0  }
   0x6   :  { %s553_s18 = smov 0   ;;  %s555_s19 = smov 0  }
   0x7 LB: > { %s339_s20 = sadd.s32 4294967295, %s519_s19   ;;  %s340_s21 = sadd.s32 4294967294, %s519_s19   ;;  %s519_s19 = sphi %s555_s19, %s16_s19   ;;  %s515_s18 = sphi %s553_s18, %s683_s18   ;;  %s511_s17 = sphi %s551_s17, %s682_s17   ;;  %s507_s16 = sphi %s549_s16, %s681_s16   ;;  %s503_s15 = sphi %s547_s15, %s680_s15   ;;  %s499_s14 = sphi %s545_s14, %s679_s14   ;;  %s495_s13 = sphi %s543_s13, %s678_s13   ;;  %s491_s12 = sphi %s541_s12, %s677_s12  }
   0x8   : > { %s28_s22 = sadd.s32 1, %s511_s17  ;;  %s35_s23 = sadd.s32 1, %s515_s18 }
   0x9   : > { %p29_p0 = scmp.ge.s32.totalorder %s28_s22, 4  ;;  %p126_p1 = scmp.ne.s32.totalorder %s499_s14, %s495_s13 }
   0xa   : > { %p127_p2 = scmp.eq.s32.totalorder %s339_s20, 7  ;;  %p132_p5 = scmp.ne.s32.totalorder %s495_s13, %s491_s12 }
   0xb   : > { %s685_s22 = smov (%p29_p0, %s28_s22), 0  ;;  %s687_s23 = smov (!%p29_p0, %s35_s23), %s515_s18 }
   0xc   : > { %s110_s24 = ssub.s32 %s511_s17, %s685_s22  ;;  %p592_p3 = por %p127_p2, %p126_p1 }
   0xd   : > { %p37_p4 = scmp.ge.s32.totalorder %s687_s23, 2  ;;  %p133_p6 = scmp.eq.s32.totalorder %s340_s21, 7 }
   0xe   : > { %p343_p7 = scmp.ge.s32.totalorder %s519_s19, 1  ;;  %p167_p9 = scmp.lt.s32.totalorder %s519_s19, 9 }
   0xf   : > { %s689_s23 = smov (%p37_p4, %s687_s23), 0  ;;  %p601_p8 = por %p133_p6, %p132_p5 }
  0x10   : > { %s109_s27 = ssub.s32 %s515_s18, %s689_s23  ;;  %s116_s28 = sadd.s32 1, %s499_s14 }
  0x11   : > { %s111_s29 = sor.u32 %s110_s24, %s109_s27  ;;  %p168_p10 = pnand %p343_p7, %p167_p9 }
  0x12   : > { %p114_p11 = scmp.eq.s32.totalorder %s111_s29, 0  ;;  %s346_s4 = sshll.u32 (!%p168_p10), %s503_s15, 5 }
  0x13   : > { %171 = sbr.rel (%p168_p10) target bundleno = 167 (0xa7), region = 32  ;;  %p193_p12 = scmp.lt.s32.totalorder (!%p168_p10), %s507_s16, 1 }
  0x14   : > { %s610_s30 = scalar_select %p114_p11, %s499_s14, %s116_s28  }
  0x15   : > { %s676_s1 = sld [smem:[#allocation5_spill]] (!%p168_p10)  ;;  %s207_s10 = scalar_lea.vmem (!%p168_p10), %s671_s2, %s503_s15 }
  0x16   : > { %s349_s28 = sshll.u32 (!%p168_p10), %s507_s16, 2  ;;  %s190_s29 = sand.u32 (!%p168_p10), 1, %s495_s13  }
  0x17   : > { %s344_s5 = sshll.u32 (!%p168_p10), %s190_s29, 3 }
  0x18   : > { %s194_s11 = scalar_select %p193_p12, %s507_s16, 1  ;;  %vm212_vm0 = vcmask 261120   ;;  %v424_v5 = vld [vmem:[%s207_s10] ss:$0 sm:$0xff]  ;;  %vm236_vm1 = vcmask 64512  }
  0x19   : > { %s239_s16 = scalar_lea.sflag [#allocation3], %s190_s29  ;;  %s445_s10 = scalar_lea.hbm %s672_s3, 64 }
  0x1a   : > { %s345_s20 = sshll.u32 %s194_s11, 3 }
  0x1b   : > { %s202_s7 = scalar_lea.vmem %s676_s1, %s346_s4  ;;  %s199_s27 = scalar_lea.vmem %s669_s0, %s345_s20 }
  0x1c   : > { %v206_v0 = vld [vmem:[%s202_s7 + $0x18] sm:$0xff]  ;;  %v205_v1 = vld [vmem:[%s202_s7 + $0x10] sm:$0xff]  ;;  %v204_v2 = vld [vmem:[%s202_s7 + $0x8] sm:$0xff]  ;;  %s250_s4 = sadd.s32 %s503_s15, %s349_s28  ;;  %s192_s1 = scalar_lea.vmem [#allocation2], %s344_s5 }
  0x1d   : > { %228 = vmatpush.msra.mxu0 %v206_v0  ;;  %v203_v3 = vld [vmem:[%s202_s7] sm:$0xff]  ;;  %s350_s6 = sshll.u32 %s250_s4, 3  ;;  %s254_s21 = sshll.u32 %s192_s1, 4  ;;  %s255_s21 = int_to_ptr.vmem [resolvable:$true] %s254_s21 }
  0x1e   : > { %v200_v4 = vld [vmem:[%s199_s27] sm:$0xff]  ;;  %s252_s11 = scalar_lea.hbm %s672_s3, %s350_s6 }
  0x1f   : > { %229 = vmatpush.msra.mxu0 %v205_v1  ;;  %s256_s20 = sshll.u32 %s252_s11, 4  ;;  %s257_s20 = int_to_ptr.hbm [resolvable:$true] %s256_s20 }
  0x20   : > { %s439_s7 = sshra.s32 %s257_s20, 4  ;;  %s440_s7 = int_to_ptr.hbm [resolvable:$true] %s439_s7 }
  0x21   : > { %230 = vmatpush.msra.mxu0 %v204_v2  ;;  %s441_s15 = scalar_lea.hbm %s440_s7, 8  ;;  %p446_p2 = scmp.lt.s32.totalorder %s440_s7, %s672_s3 }
  0x22   : > { %p442_p13 = scmp.ne.s32.totalorder %s440_s7, %s441_s15  ;;  %p447_p4 = scmp.lt.s32.totalorder %s445_s10, %s441_s15 }
  0x23   : > { %231 = vmatpush.msra.mxu0 %v203_v3 }
  0x24   : > { %347 = vmatmul.msk.f32.vlgmr.msra.gmra.mxu0 %vm212_vm0, %v200_v4  ;;  %p443_p0 = pnand %p442_p13, %p592_p3  ;;  %p448_p5 = por %p447_p4, %p446_p2 }
  0x26   : > { %p444_p1 = pneg %p443_p0 }
  0x28   : > { %p449_p6 = pnand %p448_p5, %p444_p1 }
  0xa1   : > { %v233_v6 = vpop.f32.mrf.mxu0 }
  0xa2   : > { %v234_v7 = vadd.f32 %v424_v5, %v233_v6 }
  0xa4   : > { %237 = vst.msk [vmem:[%s192_s1] sm:$0xff] %vm236_vm1, %v234_v7 }
  0xa5   : > { %452 = shalt.err (!%p449_p6)
}
  0xa6   : > { %353 = dma.vmem_to_hbm [thread:$0]  (%p592_p3), %s255_s21, 128, %s257_s20, %s239_s16  }
  0xa7 PF: > { %p359_p7 = scmp.ge.s32.totalorder %s519_s19, 2  ;;  %s268_s1 = sand.u32 1, %s491_s12  }
  0xa8   : > { %s269_s29 = scalar_lea.sflag [#allocation3], %s268_s1 }
  0xa9   : > { %p356_p9 = pnand %p359_p7, %p601_p8 }
  0xab   : > { %p357_p10 = pneg %p356_p9 }
  0xad   : > { %486 = dma.done.wait (%p357_p10), %s269_s29, 128  }
  0xae   : > { %488 = vsyncadd (%p357_p10), %s269_s29, 4294967168  ;;  %s16_s19 = sadd.s32 1, %s519_s19   ;;  %s677_s12 = smov %s495_s13 }
  0xaf   : > { %p13_p11 = scmp.ge.s32.totalorder %s16_s19, 10   ;;  %s678_s13 = smov %s499_s14 }
  0xb0   : > { %s679_s14 = smov %s610_s30  ;;  %s680_s15 = smov %s511_s17 }
  0xb1   : > { %s681_s16 = smov %s515_s18  ;;  %s682_s17 = smov %s685_s22 }
  0xb2   : > { %s683_s18 = smov %s689_s23  ;;  %15 = sbr.rel (!%p13_p11) target bundleno = 7 (0x7), region = 69 }
  0xb7   :  { %275 = vsyncpa [#allocation3], 1 }
  0xb8   :  { %277 = vsyncpa [#allocation3 + $0x1], 1 }

</bundles_post_ra>
